<compile_context>
chip_gen: v5e
topology: v5e:2x2
jax: 0.10.0
libtpu: 0.0.40
codegen_flags: <defaults>
</compile_context>

<pallas_src>
import functools
from typing import NamedTuple

import jax
import jax.numpy as jnp
from jax.experimental import pallas as pl
from jax.experimental.pallas import tpu as pltpu


def _round_up(x, m):
    return ((x + m - 1) // m) * m


def _pick_tile(dim, unit, max_tile):
    """Largest multiple of `unit` that divides `dim` and is <= max_tile (all static)."""
    best = unit
    t = unit
    while t <= min(max_tile, dim):
        if dim % t == 0:
            best = t
        t += unit
    return best


class LayerSpec(NamedTuple):
    stride: int
    pad: int
    lrelu: bool
    kh: int
    kw: int
    ci: int
    co: int
    use_pallas: bool


# ----------------------------- Pallas kernel --------------------------------


def _matmul_bias_act_kernel(p_ref, w_ref, b_ref, o_ref, acc_ref, *, apply_lrelu, slope):
    """acc += P_tile @ W_tile (bf16 in, f32 acc); last-K epilogue: +bias, LeakyReLU, store."""
    k = pl.program_id(2)

    @pl.when(k == 0)
    def _init():
        acc_ref[...] = jnp.zeros_like(acc_ref)

    acc_ref[...] += jnp.dot(p_ref[...], w_ref[...], preferred_element_type=jnp.float32)

    @pl.when(k == pl.num_programs(2) - 1)
    def _epilogue():
        acc = acc_ref[...] + b_ref[...]          # f32 elementwise (v5e has no bf16 VPU)
        if apply_lrelu:
            acc = jnp.where(acc > 0, acc, slope * acc)
        o_ref[...] = acc.astype(o_ref.dtype)     # bf16 store for intermediate layers


def _conv_matmul_pallas(patches, w2d, bias2d, out_dtype, apply_lrelu, tm, tn, tk, slope=0.01):
    Mp, Kp = patches.shape
    Cop = w2d.shape[1]
    kernel = functools.partial(_matmul_bias_act_kernel, apply_lrelu=apply_lrelu, slope=slope)
    return pl.pallas_call(
        kernel,
        out_shape=jax.ShapeDtypeStruct((Mp, Cop), out_dtype),
        grid_spec=pltpu.PrefetchScalarGridSpec(
            num_scalar_prefetch=0,
            grid=(Mp // tm, Cop // tn, Kp // tk),
            in_specs=[
                pl.BlockSpec((tm, tk), lambda i, j, k: (i, k)),   # patches (bf16)
                pl.BlockSpec((tk, tn), lambda i, j, k: (k, j)),   # pre-packed weights (bf16)
                pl.BlockSpec((1, tn), lambda i, j, k: (0, j)),    # bias (f32, epilogue only)
            ],
            out_specs=pl.BlockSpec((tm, tn), lambda i, j, k: (i, j)),
            scratch_shapes=[pltpu.VMEM((tm, tn), jnp.float32)],
        ),
        compiler_params=pltpu.CompilerParams(
            dimension_semantics=("parallel", "parallel", "arbitrary"),
            vmem_limit_bytes=32 * 1024 * 1024,
        ),
    )(patches, w2d, bias2d)


# ----------------------------- conv wrappers ---------------------------------


def _im2col(x_nhwc, kh, kw, stride, pad):
    """Extract conv patches -> (N*Ho*Wo, kh*kw*C) in the input dtype (bf16 here)."""
    N, H, W, C = x_nhwc.shape
    xp = jnp.pad(x_nhwc, ((0, 0), (pad, pad), (pad, pad), (0, 0)))
    Ho = (H + 2 * pad - kh) // stride + 1
    Wo = (W + 2 * pad - kw) // stride + 1
    cols = []
    for i in range(kh):
        for j in range(kw):
            cols.append(xp[:, i:i + stride * Ho:stride, j:j + stride * Wo:stride, :])
    p = jnp.stack(cols, axis=3)  # (N, Ho, Wo, kh*kw, C)
    return p.reshape(N * Ho * Wo, kh * kw * C), Ho, Wo


def _conv2d_pallas_layer(h_bf16, w_padded, bias_padded, spec):
    N = h_bf16.shape[0]
    patches, Ho, Wo = _im2col(h_bf16, spec.kh, spec.kw, spec.stride, spec.pad)  # bf16
    M, K = patches.shape
    Kp, Cop = w_padded.shape            # static, pre-padded to 128-multiples

    Mp = _round_up(M, 16)               # bf16 packs 2 rows per sublane -> 16-row alignment
    tm = _pick_tile(Mp, 16, 512)
    tk = _pick_tile(Kp, 128, 1024)
    tn = _pick_tile(Cop, 128, 512)
    # v7x has 2 TensorCores: avoid a (1,1,K) grid when M can be split.
    if Mp // tm == 1 and Cop // tn == 1 and Mp >= 32:
        tm = _pick_tile(Mp, 16, max(16, Mp // 2))

    patches_p = jnp.pad(patches, ((0, Mp - M), (0, Kp - K)))
    out_dtype = jnp.bfloat16 if spec.lrelu else jnp.float32
    out = _conv_matmul_pallas(patches_p, w_padded, bias_padded, out_dtype,
                              spec.lrelu, tm, tn, tk)
    return out[:M, :spec.co].reshape(N, Ho, Wo, spec.co)


def _conv2d_small_jax(h_bf16, w2d, bias, spec):
    """Tiny-Co head (Co=1, 3x3): padded Pallas matmul would waste 128x of MXU columns."""
    N = h_bf16.shape[0]
    patches, Ho, Wo = _im2col(h_bf16, spec.kh, spec.kw, spec.stride, spec.pad)
    out = jnp.dot(patches, w2d, preferred_element_type=jnp.float32) + bias
    if spec.lrelu:
        out = jnp.where(out > 0, out, 0.01 * out)
    return out.reshape(N, Ho, Wo, spec.co)


# ----------------------------- params / forward ------------------------------


def init_discriminator_params(key, conv_dim, ndim, repeat_num):
    """Deterministic synthetic params matching nn.Conv2d default init shapes."""
    params = []
    in_c = 3 + ndim
    out_c = conv_dim
    for _ in range(repeat_num):
        key, kw_, kb_ = jax.random.split(key, 3)
        fan_in = in_c * 4 * 4
        bound = 1.0 / (fan_in ** 0.5)
        w = jax.random.uniform(kw_, (out_c, in_c, 4, 4), jnp.float32, -bound, bound)
        b = jax.random.uniform(kb_, (out_c,), jnp.float32, -bound, bound)
        params.append({"w": w, "b": b, "stride": 2, "pad": 1, "lrelu": True})
        in_c, out_c = out_c, out_c * 2
    # conv1: 1 output channel, 3x3, stride 1, pad 1, bias=False
    key, kw_ = jax.random.split(key)
    fan_in = in_c * 3 * 3
    bound = 1.0 / (fan_in ** 0.5)
    w = jax.random.uniform(kw_, (1, in_c, 3, 3), jnp.float32, -bound, bound)
    params.append({"w": w, "b": jnp.zeros((1,), jnp.float32),
                   "stride": 1, "pad": 1, "lrelu": False})
    return params


def pack_discriminator_params(params):
    """One-time weight packing: OIHW -> (K, Co), bf16 cast, 128-padding (off the hot path)."""
    packed, specs = [], []
    for layer in params:
        w, b = layer["w"], layer["b"]
        Co, Ci, kh, kw = w.shape
        use_pallas = Co >= 8  # route tiny-Co layers (1-channel head) to the small JAX path
        K = kh * kw * Ci
        w2d = jnp.transpose(w, (2, 3, 1, 0)).reshape(K, Co).astype(jnp.bfloat16)
        if use_pallas:
            Kp, Cop = _round_up(K, 128), _round_up(Co, 128)
            w_arr = jnp.pad(w2d, ((0, Kp - K), (0, Cop - Co)))
            b_arr = jnp.pad(b.astype(jnp.float32).reshape(1, Co), ((0, 0), (0, Cop - Co)))
        else:
            w_arr = w2d
            b_arr = b.astype(jnp.float32).reshape(1, Co)
        packed.append((w_arr, b_arr))
        specs.append(LayerSpec(layer["stride"], layer["pad"], layer["lrelu"],
                               kh, kw, Ci, Co, use_pallas))
    return packed, tuple(specs)


def discriminator_forward(packed, x_nchw, *, specs):
    # NCHW in -> NHWC bf16 internally (cast once) -> NCHW f32 out (matches PyTorch layout).
    h = jnp.transpose(x_nchw, (0, 2, 3, 1)).astype(jnp.bfloat16)
    for (w_arr, b_arr), spec in zip(packed, specs):
        if spec.use_pallas:
            h = _conv2d_pallas_layer(h, w_arr, b_arr, spec)
        else:
            h = _conv2d_small_jax(h, w_arr, b_arr, spec)
    return jnp.transpose(h, (0, 3, 1, 2)).astype(jnp.float32)


# ----------------------------- reference -------------------------------------


def _ref_forward(params, x_nchw, mxu_bf16=False):
    """Pure-JAX reference. mxu_bf16=True mirrors the kernel (bf16 inputs/intermediates, f32 acc)."""
    h = x_nchw.astype(jnp.float32)
    for layer in params:
        lhs = h.astype(jnp.bfloat16) if mxu_bf16 else h
        rhs = layer["w"].astype(jnp.bfloat16) if mxu_bf16 else layer["w"]
        h = jax.lax.conv_general_dilated(
            lhs, rhs,
            (layer["stride"], layer["stride"]),
            [(layer["pad"], layer["pad"])] * 2,
            dimension_numbers=("NCHW", "OIHW", "NCHW"),
            preferred_element_type=jnp.float32,
        )
        h = h + layer["b"].reshape(1, -1, 1, 1)
        if layer["lrelu"]:
            h = jnp.where(h > 0, h, 0.01 * h)
            if mxu_bf16:
                h = h.astype(jnp.bfloat16).astype(jnp.float32)  # kernel stores bf16 intermediates
    return h


if __name__ == "__main__":
    # Small-but-consistent config: image_size=16, conv_dim=8, ndim=5, repeat_num=3
    image_size, conv_dim, ndim, repeat_num = 16, 8, 5, 3
    key = jax.random.PRNGKey(0)
    kx, kp = jax.random.split(key)
    x = jax.random.normal(kx, (2, 3 + ndim, image_size, image_size), jnp.float32)

    params = init_discriminator_params(kp, conv_dim, ndim, repeat_num)
    packed, specs = pack_discriminator_params(params)

    fwd = jax.jit(functools.partial(discriminator_forward, specs=specs))
    out = jax.block_until_ready(fwd(packed, x))

    expected_spatial = image_size // (2 ** repeat_num)
    assert out.shape == (2, 1, expected_spatial, expected_spatial), out.shape

    # bf16-matched reference: same math as the kernel (bf16 MXU inputs + bf16 intermediates).
    ref_bf16 = _ref_forward(params, x, mxu_bf16=True)
    err_bf16 = float(jnp.max(jnp.abs(out - ref_bf16)))
    assert jnp.allclose(out, ref_bf16, atol=2e-2, rtol=2e-2), err_bf16

    # full-f32 reference: looser tolerance accounts for bf16 inputs/intermediates.
    ref_f32 = _ref_forward(params, x, mxu_bf16=False)
    err_f32 = float(jnp.max(jnp.abs(out - ref_f32)))
    assert jnp.allclose(out, ref_f32, atol=1e-1, rtol=1e-1), err_f32

    print("KERNEL_OK")
</pallas_src>

<mosaic_0001>
module attributes {stable_mosaic.version = 11 : i64} {
  func.func @_matmul_bias_act_kernel(%arg0: i32, %arg1: i32, %arg2: i32, %arg3: memref<64x128xbf16, #tpu.memory_space<vmem>>, %arg4: memref<128x128xbf16, #tpu.memory_space<vmem>>, %arg5: memref<1x128xf32, #tpu.memory_space<vmem>>, %arg6: memref<64x128xbf16, #tpu.memory_space<vmem>>, %arg7: memref<64x128xf32, #tpu.memory_space<vmem>>) attributes {dimension_semantics = [#tpu.dimension_semantics<parallel>, #tpu.dimension_semantics<parallel>, #tpu.dimension_semantics<arbitrary>], iteration_bounds = array<i64: 2, 1, 1>, scalar_prefetch = 0 : i64, scratch_operands = 1 : i64, tpu.core_type = #tpu.core_type<tc>, window_params = [{transform_indices = @transform_0, window_bounds = array<i64: 64, 128>}, {transform_indices = @transform_1, window_bounds = array<i64: 128, 128>}, {transform_indices = @transform_2, window_bounds = array<i64: 1, 128>}, {transform_indices = @transform_3, window_bounds = array<i64: 64, 128>}]} {
    %c0_i32 = arith.constant 0 : i32
    %0 = arith.cmpi eq, %arg2, %c0_i32 : i32
    %1 = arith.extui %0 : i1 to i32
    %c0_i32_0 = arith.constant 0 : i32
    %2 = arith.cmpi ne, %1, %c0_i32_0 : i32
    scf.if %2 {
      %cst_10 = arith.constant 0.000000e+00 : f32
      %12 = vector.broadcast %cst_10 : f32 to vector<64x128xf32>
      %c0_11 = arith.constant 0 : index
      %c0_12 = arith.constant 0 : index
      %13 = vector.load %arg7[%c0_11, %c0_12] : memref<64x128xf32, #tpu.memory_space<vmem>>, vector<64x128xf32>
      tpu.vector_store %arg7[%c0_11, %c0_12], %12 {strides = array<i32>} : memref<64x128xf32, #tpu.memory_space<vmem>>, vector<64x128xf32>,
    } else {
    }
    %c0 = arith.constant 0 : index
    %c0_1 = arith.constant 0 : index
    %3 = vector.load %arg7[%c0, %c0_1] : memref<64x128xf32, #tpu.memory_space<vmem>>, vector<64x128xf32>
    %c0_2 = arith.constant 0 : index
    %c0_3 = arith.constant 0 : index
    %4 = vector.load %arg3[%c0_2, %c0_3] : memref<64x128xbf16, #tpu.memory_space<vmem>>, vector<64x128xbf16>
    %c0_4 = arith.constant 0 : index
    %c0_5 = arith.constant 0 : index
    %5 = vector.load %arg4[%c0_4, %c0_5] : memref<128x128xbf16, #tpu.memory_space<vmem>>, vector<128x128xbf16>
    %cst = arith.constant dense<0.000000e+00> : vector<64x128xf32>
    %6 = tpu.matmul %4, %5, %cst {dimension_numbers = #tpu.dot_dimension_numbers<[1], [0], [0], [1], [0, 0, 1, 1], [], []>} : vector<64x128xbf16>, vector<128x128xbf16>, vector<64x128xf32> -> vector<64x128xf32>
    %7 = arith.addf %3, %6 : vector<64x128xf32>
    %c0_6 = arith.constant 0 : index
    %c0_7 = arith.constant 0 : index
    %8 = vector.load %arg7[%c0_6, %c0_7] : memref<64x128xf32, #tpu.memory_space<vmem>>, vector<64x128xf32>
    tpu.vector_store %arg7[%c0_6, %c0_7], %7 {strides = array<i32>} : memref<64x128xf32, #tpu.memory_space<vmem>>, vector<64x128xf32>,
    %c0_i32_8 = arith.constant 0 : i32
    %9 = arith.cmpi eq, %arg2, %c0_i32_8 : i32
    %10 = arith.extui %9 : i1 to i32
    %c0_i32_9 = arith.constant 0 : i32
    %11 = arith.cmpi ne, %10, %c0_i32_9 : i32
    scf.if %11 {
      %c0_10 = arith.constant 0 : index
      %c0_11 = arith.constant 0 : index
      %12 = vector.load %arg7[%c0_10, %c0_11] : memref<64x128xf32, #tpu.memory_space<vmem>>, vector<64x128xf32>
      %c0_12 = arith.constant 0 : index
      %c0_13 = arith.constant 0 : index
      %13 = vector.load %arg5[%c0_12, %c0_13] : memref<1x128xf32, #tpu.memory_space<vmem>>, vector<1x128xf32>
      %14 = vector.broadcast %13 : vector<1x128xf32> to vector<64x128xf32>
      %15 = arith.addf %12, %14 : vector<64x128xf32>
      %cst_14 = arith.constant 0.000000e+00 : f32
      %16 = vector.broadcast %cst_14 : f32 to vector<64x128xf32>
      %17 = arith.cmpf ogt, %15, %16 : vector<64x128xf32>
      %cst_15 = arith.constant 0.00999999977 : f32
      %18 = vector.broadcast %cst_15 : f32 to vector<64x128xf32>
      %19 = arith.mulf %18, %15 : vector<64x128xf32>
      %20 = arith.select %17, %15, %19 : vector<64x128xi1>, vector<64x128xf32>
      %21 = arith.truncf %20 : vector<64x128xf32> to vector<64x128xbf16>
      %c0_16 = arith.constant 0 : index
      %c0_17 = arith.constant 0 : index
      %22 = vector.load %arg6[%c0_16, %c0_17] : memref<64x128xbf16, #tpu.memory_space<vmem>>, vector<64x128xbf16>
      tpu.vector_store %arg6[%c0_16, %c0_17], %21 {strides = array<i32>} : memref<64x128xbf16, #tpu.memory_space<vmem>>, vector<64x128xbf16>,
    } else {
    }
    return
  }
  func.func @transform_0(%arg0: i32, %arg1: i32, %arg2: i32) -> (i32, i32) {
    %c0_i32 = arith.constant 0 : i32
    return %arg0, %arg2 : i32, i32
  }
  func.func @transform_1(%arg0: i32, %arg1: i32, %arg2: i32) -> (i32, i32) {
    %c0_i32 = arith.constant 0 : i32
    return %arg2, %arg1 : i32, i32
  }
  func.func @transform_2(%arg0: i32, %arg1: i32, %arg2: i32) -> (i32, i32) {
    %c0_i32 = arith.constant 0 : i32
    %c0_i32_0 = arith.constant 0 : i32
    return %c0_i32, %arg1 : i32, i32
  }
  func.func @transform_3(%arg0: i32, %arg1: i32, %arg2: i32) -> (i32, i32) {
    %c0_i32 = arith.constant 0 : i32
    return %arg0, %arg1 : i32, i32
  }
}

module attributes {stable_mosaic.version = 11 : i64} {
  func.func @_matmul_bias_act_kernel(%arg0: i32, %arg1: i32, %arg2: i32, %arg3: memref<16x128xbf16, #tpu.memory_space<vmem>>, %arg4: memref<128x128xbf16, #tpu.memory_space<vmem>>, %arg5: memref<1x128xf32, #tpu.memory_space<vmem>>, %arg6: memref<16x128xbf16, #tpu.memory_space<vmem>>, %arg7: memref<16x128xf32, #tpu.memory_space<vmem>>) attributes {dimension_semantics = [#tpu.dimension_semantics<parallel>, #tpu.dimension_semantics<parallel>, #tpu.dimension_semantics<arbitrary>], iteration_bounds = array<i64: 2, 1, 1>, scalar_prefetch = 0 : i64, scratch_operands = 1 : i64, tpu.core_type = #tpu.core_type<tc>, window_params = [{transform_indices = @transform_0, window_bounds = array<i64: 16, 128>}, {transform_indices = @transform_1, window_bounds = array<i64: 128, 128>}, {transform_indices = @transform_2, window_bounds = array<i64: 1, 128>}, {transform_indices = @transform_3, window_bounds = array<i64: 16, 128>}]} {
    %c0_i32 = arith.constant 0 : i32
    %0 = arith.cmpi eq, %arg2, %c0_i32 : i32
    %1 = arith.extui %0 : i1 to i32
    %c0_i32_0 = arith.constant 0 : i32
    %2 = arith.cmpi ne, %1, %c0_i32_0 : i32
    scf.if %2 {
      %cst_10 = arith.constant 0.000000e+00 : f32
      %12 = vector.broadcast %cst_10 : f32 to vector<16x128xf32>
      %c0_11 = arith.constant 0 : index
      %c0_12 = arith.constant 0 : index
      %13 = vector.load %arg7[%c0_11, %c0_12] : memref<16x128xf32, #tpu.memory_space<vmem>>, vector<16x128xf32>
      tpu.vector_store %arg7[%c0_11, %c0_12], %12 {strides = array<i32>} : memref<16x128xf32, #tpu.memory_space<vmem>>, vector<16x128xf32>,
    } else {
    }
    %c0 = arith.constant 0 : index
    %c0_1 = arith.constant 0 : index
    %3 = vector.load %arg7[%c0, %c0_1] : memref<16x128xf32, #tpu.memory_space<vmem>>, vector<16x128xf32>
    %c0_2 = arith.constant 0 : index
    %c0_3 = arith.constant 0 : index
    %4 = vector.load %arg3[%c0_2, %c0_3] : memref<16x128xbf16, #tpu.memory_space<vmem>>, vector<16x128xbf16>
    %c0_4 = arith.constant 0 : index
    %c0_5 = arith.constant 0 : index
    %5 = vector.load %arg4[%c0_4, %c0_5] : memref<128x128xbf16, #tpu.memory_space<vmem>>, vector<128x128xbf16>
    %cst = arith.constant dense<0.000000e+00> : vector<16x128xf32>
    %6 = tpu.matmul %4, %5, %cst {dimension_numbers = #tpu.dot_dimension_numbers<[1], [0], [0], [1], [0, 0, 1, 1], [], []>} : vector<16x128xbf16>, vector<128x128xbf16>, vector<16x128xf32> -> vector<16x128xf32>
    %7 = arith.addf %3, %6 : vector<16x128xf32>
    %c0_6 = arith.constant 0 : index
    %c0_7 = arith.constant 0 : index
    %8 = vector.load %arg7[%c0_6, %c0_7] : memref<16x128xf32, #tpu.memory_space<vmem>>, vector<16x128xf32>
    tpu.vector_store %arg7[%c0_6, %c0_7], %7 {strides = array<i32>} : memref<16x128xf32, #tpu.memory_space<vmem>>, vector<16x128xf32>,
    %c0_i32_8 = arith.constant 0 : i32
    %9 = arith.cmpi eq, %arg2, %c0_i32_8 : i32
    %10 = arith.extui %9 : i1 to i32
    %c0_i32_9 = arith.constant 0 : i32
    %11 = arith.cmpi ne, %10, %c0_i32_9 : i32
    scf.if %11 {
      %c0_10 = arith.constant 0 : index
      %c0_11 = arith.constant 0 : index
      %12 = vector.load %arg7[%c0_10, %c0_11] : memref<16x128xf32, #tpu.memory_space<vmem>>, vector<16x128xf32>
      %c0_12 = arith.constant 0 : index
      %c0_13 = arith.constant 0 : index
      %13 = vector.load %arg5[%c0_12, %c0_13] : memref<1x128xf32, #tpu.memory_space<vmem>>, vector<1x128xf32>
      %14 = vector.broadcast %13 : vector<1x128xf32> to vector<16x128xf32>
      %15 = arith.addf %12, %14 : vector<16x128xf32>
      %cst_14 = arith.constant 0.000000e+00 : f32
      %16 = vector.broadcast %cst_14 : f32 to vector<16x128xf32>
      %17 = arith.cmpf ogt, %15, %16 : vector<16x128xf32>
      %cst_15 = arith.constant 0.00999999977 : f32
      %18 = vector.broadcast %cst_15 : f32 to vector<16x128xf32>
      %19 = arith.mulf %18, %15 : vector<16x128xf32>
      %20 = arith.select %17, %15, %19 : vector<16x128xi1>, vector<16x128xf32>
      %21 = arith.truncf %20 : vector<16x128xf32> to vector<16x128xbf16>
      %c0_16 = arith.constant 0 : index
      %c0_17 = arith.constant 0 : index
      %22 = vector.load %arg6[%c0_16, %c0_17] : memref<16x128xbf16, #tpu.memory_space<vmem>>, vector<16x128xbf16>
      tpu.vector_store %arg6[%c0_16, %c0_17], %21 {strides = array<i32>} : memref<16x128xbf16, #tpu.memory_space<vmem>>, vector<16x128xbf16>,
    } else {
    }
    return
  }
  func.func @transform_0(%arg0: i32, %arg1: i32, %arg2: i32) -> (i32, i32) {
    %c0_i32 = arith.constant 0 : i32
    return %arg0, %arg2 : i32, i32
  }
  func.func @transform_1(%arg0: i32, %arg1: i32, %arg2: i32) -> (i32, i32) {
    %c0_i32 = arith.constant 0 : i32
    return %arg2, %arg1 : i32, i32
  }
  func.func @transform_2(%arg0: i32, %arg1: i32, %arg2: i32) -> (i32, i32) {
    %c0_i32 = arith.constant 0 : i32
    %c0_i32_0 = arith.constant 0 : i32
    return %c0_i32, %arg1 : i32, i32
  }
  func.func @transform_3(%arg0: i32, %arg1: i32, %arg2: i32) -> (i32, i32) {
    %c0_i32 = arith.constant 0 : i32
    return %arg0, %arg1 : i32, i32
  }
}

module attributes {stable_mosaic.version = 11 : i64} {
  func.func @_matmul_bias_act_kernel(%arg0: i32, %arg1: i32, %arg2: i32, %arg3: memref<16x256xbf16, #tpu.memory_space<vmem>>, %arg4: memref<256x128xbf16, #tpu.memory_space<vmem>>, %arg5: memref<1x128xf32, #tpu.memory_space<vmem>>, %arg6: memref<16x128xbf16, #tpu.memory_space<vmem>>, %arg7: memref<16x128xf32, #tpu.memory_space<vmem>>) attributes {dimension_semantics = [#tpu.dimension_semantics<parallel>, #tpu.dimension_semantics<parallel>, #tpu.dimension_semantics<arbitrary>], iteration_bounds = array<i64: 1, 1, 1>, scalar_prefetch = 0 : i64, scratch_operands = 1 : i64, tpu.core_type = #tpu.core_type<tc>, window_params = [{transform_indices = @transform_0, window_bounds = array<i64: 16, 256>}, {transform_indices = @transform_1, window_bounds = array<i64: 256, 128>}, {transform_indices = @transform_2, window_bounds = array<i64: 1, 128>}, {transform_indices = @transform_3, window_bounds = array<i64: 16, 128>}]} {
    %c0_i32 = arith.constant 0 : i32
    %0 = arith.cmpi eq, %arg2, %c0_i32 : i32
    %1 = arith.extui %0 : i1 to i32
    %c0_i32_0 = arith.constant 0 : i32
    %2 = arith.cmpi ne, %1, %c0_i32_0 : i32
    scf.if %2 {
      %cst_10 = arith.constant 0.000000e+00 : f32
      %12 = vector.broadcast %cst_10 : f32 to vector<16x128xf32>
      %c0_11 = arith.constant 0 : index
      %c0_12 = arith.constant 0 : index
      %13 = vector.load %arg7[%c0_11, %c0_12] : memref<16x128xf32, #tpu.memory_space<vmem>>, vector<16x128xf32>
      tpu.vector_store %arg7[%c0_11, %c0_12], %12 {strides = array<i32>} : memref<16x128xf32, #tpu.memory_space<vmem>>, vector<16x128xf32>,
    } else {
    }
    %c0 = arith.constant 0 : index
    %c0_1 = arith.constant 0 : index
    %3 = vector.load %arg7[%c0, %c0_1] : memref<16x128xf32, #tpu.memory_space<vmem>>, vector<16x128xf32>
    %c0_2 = arith.constant 0 : index
    %c0_3 = arith.constant 0 : index
    %4 = vector.load %arg3[%c0_2, %c0_3] : memref<16x256xbf16, #tpu.memory_space<vmem>>, vector<16x256xbf16>
    %c0_4 = arith.constant 0 : index
    %c0_5 = arith.constant 0 : index
    %5 = vector.load %arg4[%c0_4, %c0_5] : memref<256x128xbf16, #tpu.memory_space<vmem>>, vector<256x128xbf16>
    %cst = arith.constant dense<0.000000e+00> : vector<16x128xf32>
    %6 = tpu.matmul %4, %5, %cst {dimension_numbers = #tpu.dot_dimension_numbers<[1], [0], [0], [1], [0, 0, 1, 1], [], []>} : vector<16x256xbf16>, vector<256x128xbf16>, vector<16x128xf32> -> vector<16x128xf32>
    %7 = arith.addf %3, %6 : vector<16x128xf32>
    %c0_6 = arith.constant 0 : index
    %c0_7 = arith.constant 0 : index
    %8 = vector.load %arg7[%c0_6, %c0_7] : memref<16x128xf32, #tpu.memory_space<vmem>>, vector<16x128xf32>
    tpu.vector_store %arg7[%c0_6, %c0_7], %7 {strides = array<i32>} : memref<16x128xf32, #tpu.memory_space<vmem>>, vector<16x128xf32>,
    %c0_i32_8 = arith.constant 0 : i32
    %9 = arith.cmpi eq, %arg2, %c0_i32_8 : i32
    %10 = arith.extui %9 : i1 to i32
    %c0_i32_9 = arith.constant 0 : i32
    %11 = arith.cmpi ne, %10, %c0_i32_9 : i32
    scf.if %11 {
      %c0_10 = arith.constant 0 : index
      %c0_11 = arith.constant 0 : index
      %12 = vector.load %arg7[%c0_10, %c0_11] : memref<16x128xf32, #tpu.memory_space<vmem>>, vector<16x128xf32>
      %c0_12 = arith.constant 0 : index
      %c0_13 = arith.constant 0 : index
      %13 = vector.load %arg5[%c0_12, %c0_13] : memref<1x128xf32, #tpu.memory_space<vmem>>, vector<1x128xf32>
      %14 = vector.broadcast %13 : vector<1x128xf32> to vector<16x128xf32>
      %15 = arith.addf %12, %14 : vector<16x128xf32>
      %cst_14 = arith.constant 0.000000e+00 : f32
      %16 = vector.broadcast %cst_14 : f32 to vector<16x128xf32>
      %17 = arith.cmpf ogt, %15, %16 : vector<16x128xf32>
      %cst_15 = arith.constant 0.00999999977 : f32
      %18 = vector.broadcast %cst_15 : f32 to vector<16x128xf32>
      %19 = arith.mulf %18, %15 : vector<16x128xf32>
      %20 = arith.select %17, %15, %19 : vector<16x128xi1>, vector<16x128xf32>
      %21 = arith.truncf %20 : vector<16x128xf32> to vector<16x128xbf16>
      %c0_16 = arith.constant 0 : index
      %c0_17 = arith.constant 0 : index
      %22 = vector.load %arg6[%c0_16, %c0_17] : memref<16x128xbf16, #tpu.memory_space<vmem>>, vector<16x128xbf16>
      tpu.vector_store %arg6[%c0_16, %c0_17], %21 {strides = array<i32>} : memref<16x128xbf16, #tpu.memory_space<vmem>>, vector<16x128xbf16>,
    } else {
    }
    return
  }
  func.func @transform_0(%arg0: i32, %arg1: i32, %arg2: i32) -> (i32, i32) {
    %c0_i32 = arith.constant 0 : i32
    return %arg0, %arg2 : i32, i32
  }
  func.func @transform_1(%arg0: i32, %arg1: i32, %arg2: i32) -> (i32, i32) {
    %c0_i32 = arith.constant 0 : i32
    return %arg2, %arg1 : i32, i32
  }
  func.func @transform_2(%arg0: i32, %arg1: i32, %arg2: i32) -> (i32, i32) {
    %c0_i32 = arith.constant 0 : i32
    %c0_i32_0 = arith.constant 0 : i32
    return %c0_i32, %arg1 : i32, i32
  }
  func.func @transform_3(%arg0: i32, %arg1: i32, %arg2: i32) -> (i32, i32) {
    %c0_i32 = arith.constant 0 : i32
    return %arg0, %arg1 : i32, i32
  }
}

</mosaic_0001>

<bundles_post_ra>
// kernel: discriminator_forward.3
= control target key start
LH: loop header
LB: loop body
LE: loop exit
PB: predicated region body
PF: predicated region fallthrough
CT: control target
= control target key end

     0   :  { %s783_s12 = smov 0   ;;  %s785_s13 = smov 0   ;;  %s853_s0 = inlined_call_operand.vmem [shape: bf16[128,128], index: 0, kind: input, shape index: {}]   ;;  %s854_s1 = inlined_call_operand.vmem [shape: bf16[128,128], index: 1, kind: input, shape index: {}]   ;;  %s855_s2 = inlined_call_operand.vmem [shape: f32[1,128], index: 2, kind: input, shape index: {}]   ;;  %s856_s3 = inlined_call_operand.vmem [shape: bf16[128,128], index: 3, kind: output, shape index: {}]  }
   0x1   :  { %s787_s14 = smov 0  }
   0x2 LB: > { %s32_s15 = sadd.s32 1, %s757_s13  ;;  %p600_p0 = scmp.ge.s32.totalorder %s761_s14, 1  ;;  %s761_s14 = sphi %s787_s14, %s13_s14   ;;  %s757_s13 = sphi %s785_s13, %s858_s13   ;;  %s753_s12 = sphi %s783_s12, %s857_s12  }
   0x3   : > { %p34_p1 = scmp.ge.s32.totalorder %s32_s15, 2  ;;  %p188_p2 = scmp.lt.s32.totalorder %s761_s14, 3 }
   0x5   : > { %s860_s15 = smov (%p34_p1, %s32_s15), 0  ;;  %p189_p3 = pnand %p600_p0, %p188_p2 }
   0x6   : > { %s601_s24 = sshll.u32 (!%p189_p3), %s753_s12, 3 }
   0x7   : > { %192 = sbr.rel (%p189_p3) target bundleno = 194 (0xc2), region = 32  ;;  %p230_p4 = scmp.lt.s32.totalorder (!%p189_p3), %s601_s24, 15 }
   0xc   : > { %v666_v0 = vld [vmem:[%s854_s1 + $0x38] sm:$0xff]  ;;  %v665_v1 = vld [vmem:[%s854_s1 + $0x30] sm:$0xff]  ;;  %v664_v2 = vld [vmem:[%s854_s1 + $0x28] sm:$0xff]  ;;  %s862_s24 = smov (!%p230_p4, %s601_s24), 15 }
   0xd   : > { %375 = vmatpush.bf16.msra.mxu0 %v666_v0  ;;  %690 = vmatpush.bf16.msra.mxu1 %v666_v0  ;;  %v663_v3 = vld [vmem:[%s854_s1 + $0x20] sm:$0xff]  ;;  %v662_v4 = vld [vmem:[%s854_s1 + $0x18] sm:$0xff]  ;;  %v661_v5 = vld [vmem:[%s854_s1 + $0x10] sm:$0xff]  ;;  %s602_s4 = sshll.u32 %s862_s24, 2 }
   0xe   : > { %691 = vmatpush.bf16.msra.mxu2 %v666_v0  ;;  %692 = vmatpush.bf16.msra.mxu3 %v666_v0  ;;  %v660_v6 = vld [vmem:[%s854_s1 + $0x8] sm:$0xff]  ;;  %v659_v7 = vld [vmem:[%s854_s1] sm:$0xff]  ;;  %s236_s9 = scalar_lea.vmem %s853_s0, %s602_s4  ;;  %s257_s17 = scalar_lea.vmem %s856_s3, %s602_s4 }
   0xf   : > { %v655_v8 = vld [vmem:[%s236_s9] sm:$0xff]  ;;  %v656_v9 = vld [vmem:[%s236_s9 + $0x8] sm:$0xff]  ;;  %v657_v10 = vld [vmem:[%s236_s9 + $0x10] sm:$0xff] }
  0x10   : > { %v658_v11 = vld [vmem:[%s236_s9 + $0x18] sm:$0xff]  ;;  %v738_v14 = vld [vmem:[%s855_s2] ss:$0 sm:$0xff] }
  0x11   : > { %376 = vmatpush.bf16.msra.mxu0 %v665_v1  ;;  %693 = vmatpush.bf16.msra.mxu1 %v665_v1 }
  0x12   : > { %694 = vmatpush.bf16.msra.mxu2 %v665_v1  ;;  %695 = vmatpush.bf16.msra.mxu3 %v665_v1 }
  0x15   : > { %377 = vmatpush.bf16.msra.mxu0 %v664_v2  ;;  %696 = vmatpush.bf16.msra.mxu1 %v664_v2 }
  0x16   : > { %697 = vmatpush.bf16.msra.mxu2 %v664_v2  ;;  %698 = vmatpush.bf16.msra.mxu3 %v664_v2 }
  0x19   : > { %378 = vmatpush.bf16.msra.mxu0 %v663_v3  ;;  %699 = vmatpush.bf16.msra.mxu1 %v663_v3 }
  0x1a   : > { %700 = vmatpush.bf16.msra.mxu2 %v663_v3  ;;  %701 = vmatpush.bf16.msra.mxu3 %v663_v3 }
  0x1d   : > { %379 = vmatpush.bf16.msra.mxu0 %v662_v4  ;;  %702 = vmatpush.bf16.msra.mxu1 %v662_v4 }
  0x1e   : > { %703 = vmatpush.bf16.msra.mxu2 %v662_v4  ;;  %704 = vmatpush.bf16.msra.mxu3 %v662_v4 }
  0x21   : > { %380 = vmatpush.bf16.msra.mxu0 %v661_v5  ;;  %705 = vmatpush.bf16.msra.mxu1 %v661_v5 }
  0x22   : > { %706 = vmatpush.bf16.msra.mxu2 %v661_v5  ;;  %707 = vmatpush.bf16.msra.mxu3 %v661_v5 }
  0x25   : > { %381 = vmatpush.bf16.msra.mxu0 %v660_v6  ;;  %708 = vmatpush.bf16.msra.mxu1 %v660_v6 }
  0x26   : > { %709 = vmatpush.bf16.msra.mxu2 %v660_v6  ;;  %710 = vmatpush.bf16.msra.mxu3 %v660_v6 }
  0x29   : > { %382 = vmatpush.bf16.msra.mxu0 %v659_v7  ;;  %711 = vmatpush.bf16.msra.mxu1 %v659_v7 }
  0x2a   : > { %712 = vmatpush.bf16.msra.mxu2 %v659_v7  ;;  %713 = vmatpush.bf16.msra.mxu3 %v659_v7 }
  0x2c   : > { %383 = vmatmul.bf16.vlgmr.msra.gmra.mxu0 %v655_v8  ;;  %388 = vmatmul.bf16.vlgmr.msra.gmra.mxu1 %v656_v9 }
  0x2d   : > { %393 = vmatmul.bf16.vlgmr.msra.gmra.mxu2 %v657_v10  ;;  %398 = vmatmul.bf16.vlgmr.msra.gmra.mxu3 %v658_v11 }
  0xa9   : > { %v384_v12 = vpop.f32.mrf.mxu0  ;;  %v389_v13 = vpop.f32.mrf.mxu1 }
  0xaa   : > { %v435_v15 = vadd.f32 %v738_v14, %v384_v12  ;;  %v437_v16 = vadd.f32 %v738_v14, %v389_v13 }
  0xac   : > { %v451_v21 = vmul.f32 0.01, %v435_v15  ;;  %v453_v22 = vmul.f32 0.01, %v437_v16  ;;  %vm443_vm0 = vcmp.gt.f32.partialorder %v435_v15, 0.0  ;;  %vm445_vm1 = vcmp.gt.f32.partialorder %v437_v16, 0.0 }
  0xae   : > { %v459_v29 = vsel %vm443_vm0, %v435_v15, %v451_v21  ;;  %v461_v30 = vsel %vm445_vm1, %v437_v16, %v453_v22 }
  0xb0   : > { %v394_v17 = vpop.f32.mrf.mxu2  ;;  %v399_v18 = vpop.f32.mrf.mxu3 }
  0xb1   : > { %v386_v19 = vpop.f32.mrf.mxu0  ;;  %v391_v20 = vpop.f32.mrf.mxu1  ;;  %v439_v27 = vadd.f32 %v738_v14, %v394_v17  ;;  %v441_v28 = vadd.f32 %v738_v14, %v399_v18 }
  0xb2   : > { %v436_v23 = vadd.f32 %v738_v14, %v386_v19  ;;  %v438_v24 = vadd.f32 %v738_v14, %v391_v20 }
  0xb3   : > { %v455_v37 = vmul.f32 0.01, %v439_v27  ;;  %v457_v38 = vmul.f32 0.01, %v441_v28  ;;  %vm447_vm4 = vcmp.gt.f32.partialorder %v439_v27, 0.0  ;;  %vm449_vm5 = vcmp.gt.f32.partialorder %v441_v28, 0.0 }
  0xb4   : > { %vm444_vm2 = vcmp.gt.f32.partialorder %v436_v23, 0.0  ;;  %v452_v25 = vmul.f32 0.01, %v436_v23  ;;  %vm446_vm3 = vcmp.gt.f32.partialorder %v438_v24, 0.0  ;;  %v454_v26 = vmul.f32 0.01, %v438_v24 }
  0xb5   : > { %v463_v43 = vsel %vm447_vm4, %v439_v27, %v455_v37  ;;  %v465_v44 = vsel %vm449_vm5, %v441_v28, %v457_v38 }
  0xb6   : > { %v460_v31 = vsel %vm444_vm2, %v436_v23, %v452_v25  ;;  %v462_v32 = vsel %vm446_vm3, %v438_v24, %v454_v26 }
  0xb7   : > { %v670_v33 = vpack.c.bf16 %v460_v31, %v459_v29  ;;  %v675_v34 = vpack.c.bf16 %v462_v32, %v461_v30 }
  0xb8   : > { %v396_v35 = vpop.f32.mrf.mxu2  ;;  %v401_v36 = vpop.f32.mrf.mxu3 }
  0xb9   : > { %671 = vst [vmem:[%s257_s17] sm:$0xff] %v670_v33   ;;  %v440_v39 = vadd.f32 %v738_v14, %v396_v35  ;;  %v442_v40 = vadd.f32 %v738_v14, %v401_v36 }
  0xba   : > { %687 = vst [vmem:[%s257_s17 + $0x8] sm:$0xff] %v675_v34  }
  0xbb   : > { %vm448_vm6 = vcmp.gt.f32.partialorder %v440_v39, 0.0  ;;  %v456_v41 = vmul.f32 0.01, %v440_v39  ;;  %vm450_vm7 = vcmp.gt.f32.partialorder %v442_v40, 0.0  ;;  %v458_v42 = vmul.f32 0.01, %v442_v40 }
  0xbd   : > { %v464_v45 = vsel %vm448_vm6, %v440_v39, %v456_v41  ;;  %v466_v46 = vsel %vm450_vm7, %v442_v40, %v458_v42 }
  0xbe   : > { %v680_v47 = vpack.c.bf16 %v464_v45, %v463_v43  ;;  %v685_v48 = vpack.c.bf16 %v466_v46, %v465_v44 }
  0xc0   : > { %688 = vst [vmem:[%s257_s17 + $0x10] sm:$0xff] %v680_v47  }
  0xc1   : > { %689 = vst [vmem:[%s257_s17 + $0x18] sm:$0xff] %v685_v48  }
  0xc2 PF: > { %s13_s14 = sadd.s32 1, %s761_s14   ;;  %s857_s12 = smov %s757_s13 }
  0xc3   : > { %p10_p5 = scmp.ge.s32.totalorder %s13_s14, 4   ;;  %s858_s13 = smov %s860_s15 }
  0xc5   :  { %12 = sbr.rel (!%p10_p5) target bundleno = 2 (0x2), region = 76 }

// kernel: discriminator_forward.4
= control target key start
LH: loop header
LB: loop body
LE: loop exit
PB: predicated region body
PF: predicated region fallthrough
CT: control target
= control target key end

     0   :  { %s621_s12 = smov 0   ;;  %s623_s13 = smov 0   ;;  %s681_s0 = inlined_call_operand.vmem [shape: bf16[32,128], index: 0, kind: input, shape index: {}]   ;;  %s682_s1 = inlined_call_operand.vmem [shape: bf16[128,128], index: 1, kind: input, shape index: {}]   ;;  %s683_s2 = inlined_call_operand.vmem [shape: f32[1,128], index: 2, kind: input, shape index: {}]   ;;  %s684_s3 = inlined_call_operand.vmem [shape: bf16[32,128], index: 3, kind: output, shape index: {}]  }
   0x1   :  { %s625_s14 = smov 0  }
   0x2 LB: > { %s32_s15 = sadd.s32 1, %s595_s13  ;;  %p495_p0 = scmp.ge.s32.totalorder %s599_s14, 1  ;;  %s599_s14 = sphi %s625_s14, %s13_s14   ;;  %s595_s13 = sphi %s623_s13, %s686_s13   ;;  %s591_s12 = sphi %s621_s12, %s685_s12  }
   0x3   : > { %p34_p1 = scmp.ge.s32.totalorder %s32_s15, 2  ;;  %p188_p2 = scmp.lt.s32.totalorder %s599_s14, 3 }
   0x5   : > { %s688_s15 = smov (%p34_p1, %s32_s15), 0  ;;  %p189_p3 = pnand %p495_p0, %p188_p2 }
   0x6   : > { %s496_s24 = sshll.u32 (!%p189_p3), %s591_s12, 1 }
   0x7   : > { %192 = sbr.rel (%p189_p3) target bundleno = 186 (0xba), region = 32  ;;  %p230_p4 = scmp.lt.s32.totalorder (!%p189_p3), %s496_s24, 3 }
   0xc   : > { %v546_v0 = vld [vmem:[%s682_s1 + $0x38] sm:$0xff]  ;;  %v545_v1 = vld [vmem:[%s682_s1 + $0x30] sm:$0xff]  ;;  %v544_v2 = vld [vmem:[%s682_s1 + $0x28] sm:$0xff]  ;;  %s690_s24 = smov (!%p230_p4, %s496_s24), 3 }
   0xd   : > { %339 = vmatpush.bf16.msra.mxu0 %v546_v0  ;;  %v543_v3 = vld [vmem:[%s682_s1 + $0x20] sm:$0xff]  ;;  %v542_v4 = vld [vmem:[%s682_s1 + $0x18] sm:$0xff]  ;;  %v541_v5 = vld [vmem:[%s682_s1 + $0x10] sm:$0xff]  ;;  %s497_s4 = sshll.u32 %s690_s24, 2 }
   0xe   : > { %v540_v6 = vld [vmem:[%s682_s1 + $0x8] sm:$0xff]  ;;  %v539_v7 = vld [vmem:[%s682_s1] sm:$0xff]  ;;  %s236_s9 = scalar_lea.vmem %s681_s0, %s497_s4  ;;  %s257_s17 = scalar_lea.vmem %s684_s3, %s497_s4 }
   0xf   : > { %v538_v8 = vld [vmem:[%s236_s9] sm:$0xff] }
  0x10   : > { %v576_v10 = vld [vmem:[%s683_s2] ss:$0 sm:$0xff] }
  0x11   : > { %340 = vmatpush.bf16.msra.mxu0 %v545_v1 }
  0x15   : > { %341 = vmatpush.bf16.msra.mxu0 %v544_v2 }
  0x19   : > { %342 = vmatpush.bf16.msra.mxu0 %v543_v3 }
  0x1d   : > { %343 = vmatpush.bf16.msra.mxu0 %v542_v4 }
  0x21   : > { %344 = vmatpush.bf16.msra.mxu0 %v541_v5 }
  0x25   : > { %345 = vmatpush.bf16.msra.mxu0 %v540_v6 }
  0x29   : > { %346 = vmatpush.bf16.msra.mxu0 %v539_v7 }
  0x2c   : > { %347 = vmatmul.bf16.vlgmr.msra.gmra.mxu0 %v538_v8 }
  0xa9   : > { %v348_v9 = vpop.f32.mrf.mxu0 }
  0xaa   : > { %v366_v11 = vadd.f32 %v576_v10, %v348_v9 }
  0xac   : > { %v370_v13 = vmul.f32 0.01, %v366_v11  ;;  %vm368_vm0 = vcmp.gt.f32.partialorder %v366_v11, 0.0 }
  0xae   : > { %v372_v16 = vsel %vm368_vm0, %v366_v11, %v370_v13 }
  0xb1   : > { %v350_v12 = vpop.f32.mrf.mxu0 }
  0xb2   : > { %v367_v14 = vadd.f32 %v576_v10, %v350_v12 }
  0xb4   : > { %vm369_vm1 = vcmp.gt.f32.partialorder %v367_v14, 0.0  ;;  %v371_v15 = vmul.f32 0.01, %v367_v14 }
  0xb6   : > { %v373_v17 = vsel %vm369_vm1, %v367_v14, %v371_v15 }
  0xb7   : > { %v550_v18 = vpack.c.bf16 %v373_v17, %v372_v16 }
  0xb9   : > { %551 = vst [vmem:[%s257_s17] sm:$0xff] %v550_v18  }
  0xba PF: > { %s13_s14 = sadd.s32 1, %s599_s14   ;;  %s685_s12 = smov %s595_s13 }
  0xbb   : > { %p10_p5 = scmp.ge.s32.totalorder %s13_s14, 4   ;;  %s686_s13 = smov %s688_s15 }
  0xbd   :  { %12 = sbr.rel (!%p10_p5) target bundleno = 2 (0x2), region = 76 }

// kernel: discriminator_forward.5
= control target key start
LH: loop header
LB: loop body
LE: loop exit
PB: predicated region body
PF: predicated region fallthrough
CT: control target
= control target key end

     0   :  { %s401_s1 = inlined_call_operand.vmem [shape: bf16[256,128], index: 1, kind: input, shape index: {}]   ;;  %s402_s0 = inlined_call_operand.vmem [shape: bf16[16,256], index: 0, kind: input, shape index: {}]   ;;  %s403_s2 = inlined_call_operand.vmem [shape: f32[1,128], index: 2, kind: input, shape index: {}]   ;;  %s404_s3 = inlined_call_operand.vmem [shape: bf16[16,128], index: 3, kind: output, shape index: {}]  }
   0x1   :  { %v300_v0 = vld [vmem:[%s401_s1 + $0x38] sm:$0xff]  ;;  %v299_v2 = vld [vmem:[%s401_s1 + $0x30] sm:$0xff]  ;;  %v298_v4 = vld [vmem:[%s401_s1 + $0x28] sm:$0xff] }
   0x2   :  { %v308_v1 = vld [vmem:[%s401_s1 + $0x78] sm:$0xff]  ;;  %162 = vmatpush.bf16.msra.mxu0 %v300_v0  ;;  %v307_v3 = vld [vmem:[%s401_s1 + $0x70] sm:$0xff]  ;;  %v306_v5 = vld [vmem:[%s401_s1 + $0x68] sm:$0xff] }
   0x3   :  { %176 = vmatpush.bf16.msra.mxu1 %v308_v1  ;;  %v297_v6 = vld [vmem:[%s401_s1 + $0x20] sm:$0xff]  ;;  %v296_v8 = vld [vmem:[%s401_s1 + $0x18] sm:$0xff]  ;;  %v295_v10 = vld [vmem:[%s401_s1 + $0x10] sm:$0xff] }
   0x4   :  { %v305_v7 = vld [vmem:[%s401_s1 + $0x60] sm:$0xff]  ;;  %v304_v9 = vld [vmem:[%s401_s1 + $0x58] sm:$0xff]  ;;  %v303_v11 = vld [vmem:[%s401_s1 + $0x50] sm:$0xff] }
   0x5   :  { %v294_v12 = vld [vmem:[%s401_s1 + $0x8] sm:$0xff]  ;;  %v293_v14 = vld [vmem:[%s401_s1] sm:$0xff] }
   0x6   :  { %163 = vmatpush.bf16.msra.mxu0 %v299_v2  ;;  %v302_v13 = vld [vmem:[%s401_s1 + $0x48] sm:$0xff]  ;;  %v301_v15 = vld [vmem:[%s401_s1 + $0x40] sm:$0xff] }
   0x7   :  { %177 = vmatpush.bf16.msra.mxu1 %v307_v3  ;;  %v221_v16 = vld [vmem:[%s402_s0] sm:$0xf]  ;;  %v292_v17 = vld [vmem:[%s402_s0 + $0x4] sm:$0xf0]  ;;  %v291_v18 = vld [vmem:[%s402_s0 + $0x4] sm:$0xf] }
   0x8   :  { %v223_v19 = vld [vmem:[%s402_s0 + $0x8] sm:$0xf0]  ;;  %v222_v20 = vor.u32 %v292_v17, %v221_v16  ;;  %v314_v25 = vld [vmem:[%s403_s2] ss:$0 sm:$0xff] }
   0x9   :  { %v226_v21 = vor.u32 %v291_v18, %v223_v19 }
   0xa   :  { %164 = vmatpush.bf16.msra.mxu0 %v298_v4 }
   0xb   :  { %178 = vmatpush.bf16.msra.mxu1 %v306_v5 }
   0xe   :  { %165 = vmatpush.bf16.msra.mxu0 %v297_v6 }
   0xf   :  { %179 = vmatpush.bf16.msra.mxu1 %v305_v7 }
  0x12   :  { %166 = vmatpush.bf16.msra.mxu0 %v296_v8 }
  0x13   :  { %180 = vmatpush.bf16.msra.mxu1 %v304_v9 }
  0x16   :  { %167 = vmatpush.bf16.msra.mxu0 %v295_v10 }
  0x17   :  { %181 = vmatpush.bf16.msra.mxu1 %v303_v11 }
  0x1a   :  { %168 = vmatpush.bf16.msra.mxu0 %v294_v12 }
  0x1b   :  { %182 = vmatpush.bf16.msra.mxu1 %v302_v13 }
  0x1e   :  { %169 = vmatpush.bf16.msra.mxu0 %v293_v14 }
  0x1f   :  { %183 = vmatpush.bf16.msra.mxu1 %v301_v15 }
  0x21   :  { %170 = vmatmul.bf16.vlgmr.msra.gmra.mxu0 %v222_v20 }
  0x22   :  { %184 = vmatmul.bf16.vlgmr.msra.gmra.mxu1 %v226_v21 }
  0x9e   :  { %v171_v22 = vpop.f32.mrf.mxu0 }
  0x9f   :  { %v185_v23 = vpop.f32.mrf.mxu1 }
  0xa0   :  { %v186_v24 = vadd.f32 %v185_v23, %v171_v22 }
  0xa2   :  { %v203_v26 = vadd.f32 %v314_v25, %v186_v24 }
  0xa4   :  { %v207_v30 = vmul.f32 0.01, %v203_v26  ;;  %vm205_vm0 = vcmp.gt.f32.partialorder %v203_v26, 0.0 }
  0xa6   :  { %v173_v27 = vpop.f32.mrf.mxu0  ;;  %v209_v33 = vsel %vm205_vm0, %v203_v26, %v207_v30 }
  0xa7   :  { %v187_v28 = vpop.f32.mrf.mxu1 }
  0xa8   :  { %v188_v29 = vadd.f32 %v187_v28, %v173_v27 }
  0xaa   :  { %v204_v31 = vadd.f32 %v314_v25, %v188_v29 }
  0xac   :  { %vm206_vm1 = vcmp.gt.f32.partialorder %v204_v31, 0.0  ;;  %v208_v32 = vmul.f32 0.01, %v204_v31 }
  0xae   :  { %v210_v34 = vsel %vm206_vm1, %v204_v31, %v208_v32 }
  0xaf   :  { %v312_v35 = vpack.c.bf16 %v210_v34, %v209_v33 }
  0xb1   :  { %313 = vst [vmem:[%s404_s3] sm:$0xff] %v312_v35  }

</bundles_post_ra>
